<compile_context>
chip_gen: v5e
topology: v5e:2x2
jax: 0.10.0
libtpu: 0.0.40
codegen_flags: <defaults>
</compile_context>

<pallas_src>
import jax
import jax.numpy as jnp
from jax.experimental import pallas as pl
from jax.experimental.pallas import tpu as pltpu

K = 3      # conv kernel size
S = 2      # conv stride
C1 = 16    # conv1 out channels
C2 = 32    # conv2 out channels
D1 = 256   # linear1 width


def conv2d_size_out(size, kernel_size=K, stride=S):
    return (size - (kernel_size - 1) - 1) // stride + 1


def _round_up(x, m):
    return ((x + m - 1) // m) * m


def _pick_batch_tile(B):
    # Two grid steps by default so v7x's two TensorCores both get work; one
    # big step only when the batch is too small to split.  Every extra grid
    # step costs ~0.35 us of pipeline overhead, so never over-split.
    if B % 16 == 0:
        return B // 2
    if B % 8 == 0:
        return B
    raise ValueError("batch must be a multiple of 8")


def dqn_forward(x, w1, b1, w2, b2, wl1, bl1, wl2, bl2, *, batch_tile=None):
    """DQNAgent forward pass on TPU via Pallas.

    x   : [B, Cin, H, W] float32 (NCHW, PyTorch convention)
    w1  : [K, K, Cin, C1] (HWIO),  b1 : [C1]
    w2  : [K, K, C1, C2] (HWIO),   b2 : [C2]
    wl1 : [H2, W2, C2, D1] (NHWC-flatten order),  bl1 : [D1]
    wl2 : [D1, 1],  bl2 : [1]
    returns q-values [B, 1] float32.
    """
    B, Cin, H, W = x.shape
    H1, W1 = conv2d_size_out(H), conv2d_size_out(W)
    H2, W2 = conv2d_size_out(H1), conv2d_size_out(W1)
    W1P = _round_up(W1, 8)          # conv1 output columns padded (7 -> 8)
    KKC0 = K * K * Cin              # conv1 im2col patch width (18)
    LW = W1P * C1                   # conv1 lane width: (w_pos, channel) = 128
    F_OH = W2 * C2                  # flattened features per conv2 output row (96)

    bt = batch_tile if batch_tile is not None else _pick_batch_tile(B)
    assert bt % 8 == 0, "batch_tile must be a multiple of 8 (sublane tile)"
    assert B % bt == 0, "batch must be divisible by batch_tile"
    nb = B // bt

    # --------------------- wrapper-side preparation -------------------------
    # Packed conv1 im2col: one row per (h_row, batch), columns ordered
    # (w_out, kh, kw, cin) so a block-diagonal weight yields the lane-dense
    # conv1 output directly.  Only the width is zero-padded (for w_out = 7);
    # those lanes are later multiplied by exact-zero weight rows.
    x_nhwc = jnp.transpose(x, (0, 2, 3, 1))
    pad_w = max(0, (W1P - 1) * S + K - W)
    xp = jnp.pad(x_nhwc, ((0, 0), (0, 0), (0, pad_w), (0, 0)))
    taps = [xp[:, kh:kh + S * (H1 - 1) + 1:S, kw:kw + S * (W1P - 1) + 1:S, :]
            for kh in range(K) for kw in range(K)]
    patches = jnp.concatenate(taps, axis=-1)            # [B, H1, W1P, KKC0]
    p1 = patches.reshape(B, H1, W1P * KKC0)             # cols: (w_out, kh, kw, cin)
    p1 = p1.reshape(nb, bt, H1, W1P * KKC0).transpose(0, 2, 1, 3)   # rows: (h, b)
    p1 = p1.reshape(nb * H1 * bt, W1P * KKC0).astype(jnp.bfloat16)

    # Block-diagonal conv1 weight: [W1P*KKC0, W1P*C1] = [144, 128].
    w1_2d = w1.reshape(KKC0, C1)
    w1_bd = jnp.kron(jnp.eye(W1P, dtype=w1.dtype), w1_2d).astype(jnp.bfloat16)
    b1_t = jnp.tile(b1, W1P).reshape(1, LW).astype(jnp.float32)

    # Structured conv2 weights: W_kh[w*C1 + c1, ow*C2 + c2] = w2[kh, w-2*ow, c1, c2]
    # when 0 <= w - 2*ow < K, else 0.  Shape [K*LW, W2*C2] = [384, 96].
    w2s = jnp.zeros((K, LW, F_OH), w2.dtype)
    for kh in range(K):
        for ow in range(W2):
            for kw in range(K):
                wp = S * ow + kw
                w2s = w2s.at[kh, wp * C1:(wp + 1) * C1,
                             ow * C2:(ow + 1) * C2].set(w2[kh, kw])
    w2s = w2s.reshape(K * LW, F_OH).astype(jnp.bfloat16)
    b2_t = jnp.tile(b2, W2).reshape(1, F_OH).astype(jnp.float32)

    wl1_2d = wl1.reshape(H2 * W2 * C2, D1).astype(jnp.bfloat16)   # rows (oh, ow, c2)
    bl1_r = bl1.reshape(1, D1).astype(jnp.float32)
    wl2_r = wl2.reshape(1, D1).astype(jnp.float32)
    bl2_r = bl2.reshape(1, 1).astype(jnp.float32)

    # ------------------------------ kernel -----------------------------------
    def kernel(p1_ref, w1_ref, b1_ref, w2_ref, b2_ref,
               wl1_ref, bl1_ref, wl2_ref, bl2_ref, out_ref, h1_ref):
        # conv1: one block-diagonal MXU matmul -> lane-dense [H1*bt, 128]
        # output (rows = (h_row, batch), lanes = (w_pos, channel)).  Single
        # full-lane unmasked store into the f32 scratch.
        y1 = jnp.dot(p1_ref[...], w1_ref[...],
                     preferred_element_type=jnp.float32)
        h1_ref[...] = jnp.maximum(y1 + b1_ref[...], 0.0)

        # conv2 + flatten + linear1, fused.  For every (oh, kh) the needed
        # activations are ONE contiguous, 8-row-aligned, full-128-lane slice
        # of h1; the structured weight covers all W2 output columns at once,
        # so there is no im2col scratch and no narrow masked store.
        z1 = bl1_ref[...]                                   # [1, D1] (broadcasts)
        for oh in range(H2):
            acc = b2_ref[...]                               # [1, 96] (broadcasts)
            for kh in range(K):
                h_blk = h1_ref[pl.ds((S * oh + kh) * bt, bt), :]
                acc = acc + jnp.dot(h_blk.astype(jnp.bfloat16),
                                    w2_ref[pl.ds(kh * LW, LW), :],
                                    preferred_element_type=jnp.float32)
            y2 = jnp.maximum(acc, 0.0).astype(jnp.bfloat16)  # [bt, 96] (ow, c2)
            z1 = z1 + jnp.dot(y2, wl1_ref[pl.ds(oh * F_OH, F_OH), :],
                              preferred_element_type=jnp.float32)
        h3 = jnp.maximum(z1, 0.0)                            # [bt, D1]

        # linear2 (D1 -> 1): VPU multiply + lane reduction, exact f32.
        out_ref[...] = (jnp.sum(h3 * wl2_ref[...], axis=-1, keepdims=True)
                        + bl2_ref[...])

    return pl.pallas_call(
        kernel,
        out_shape=jax.ShapeDtypeStruct((B, 1), jnp.float32),
        grid=(nb,),
        in_specs=[
            pl.BlockSpec((H1 * bt, W1P * KKC0), lambda i: (i, 0)),  # packed conv1 patches
            pl.BlockSpec((W1P * KKC0, LW), lambda i: (0, 0)),       # block-diag W1 (resident)
            pl.BlockSpec((1, LW), lambda i: (0, 0)),                # b1 tiled per (w, c)
            pl.BlockSpec((K * LW, F_OH), lambda i: (0, 0)),         # structured conv2 weights
            pl.BlockSpec((1, F_OH), lambda i: (0, 0)),              # b2 tiled per (ow, c)
            pl.BlockSpec((H2 * W2 * C2, D1), lambda i: (0, 0)),     # wl1 (resident)
            pl.BlockSpec((1, D1), lambda i: (0, 0)),                # bl1
            pl.BlockSpec((1, D1), lambda i: (0, 0)),                # wl2 row vector
            pl.BlockSpec((1, 1), lambda i: (0, 0)),                 # bl2
        ],
        out_specs=pl.BlockSpec((bt, 1), lambda i: (i, 0)),
        scratch_shapes=[
            pltpu.VMEM((H1 * bt, LW), jnp.float32),   # lane-dense conv1 output
        ],
        compiler_params=pltpu.CompilerParams(
            dimension_semantics=("parallel",),
            vmem_limit_bytes=32 * 1024 * 1024),
    )(p1, w1_bd, b1_t, w2s, b2_t, wl1_2d, bl1_r, wl2_r, bl2_r)


def dqn_forward_ref(x, w1, b1, w2, b2, wl1, bl1, wl2, bl2):
    """Pure-JAX reference mirroring the kernel's bf16-operand / f32-accumulate numerics."""
    bf = jnp.bfloat16
    y = jnp.transpose(x, (0, 2, 3, 1)).astype(bf)
    y = jax.lax.conv_general_dilated(
        y, w1.astype(bf), (S, S), 'VALID',
        dimension_numbers=('NHWC', 'HWIO', 'NHWC'),
        preferred_element_type=jnp.float32)
    y = jnp.maximum(y + b1.reshape(1, 1, 1, -1), 0.0).astype(bf)
    y = jax.lax.conv_general_dilated(
        y, w2.astype(bf), (S, S), 'VALID',
        dimension_numbers=('NHWC', 'HWIO', 'NHWC'),
        preferred_element_type=jnp.float32)
    y = jnp.maximum(y + b2.reshape(1, 1, 1, -1), 0.0).astype(bf)
    y = y.reshape(y.shape[0], -1)                               # NHWC (h, w, c) flatten
    z = jnp.dot(y, wl1.reshape(-1, D1).astype(bf),
                preferred_element_type=jnp.float32)
    h = jnp.maximum(z + bl1.reshape(1, -1), 0.0)
    return (h * wl2.reshape(1, D1)).sum(axis=-1, keepdims=True) + bl2.reshape(1, 1)


# TODO(synk): get_qvalues / sample_actions are host-side numpy epsilon-greedy
# control flow (ragged action lists, np.random) — not part of the forward hot
# path and not ported to Pallas.

if __name__ == "__main__":
    # PyTorch forward: state_t is [batch, 2, h, w] (NCHW, 2-frame buffer).
    B, Cin, H, W = 16, 2, 16, 16
    key = jax.random.PRNGKey(0)
    ks = jax.random.split(key, 9)

    x = jax.random.normal(ks[0], (B, Cin, H, W), jnp.float32)

    H1, W1 = conv2d_size_out(H), conv2d_size_out(W)          # 7, 7
    H2, W2 = conv2d_size_out(H1), conv2d_size_out(W1)        # 3, 3

    # Deterministic synthetic parameters (shapes match nn.Conv2d / nn.Linear).
    w1 = jax.random.normal(ks[1], (K, K, Cin, C1), jnp.float32) * 0.1
    b1 = jax.random.normal(ks[2], (C1,), jnp.float32) * 0.1
    w2 = jax.random.normal(ks[3], (K, K, C1, C2), jnp.float32) * 0.1
    b2 = jax.random.normal(ks[4], (C2,), jnp.float32) * 0.1
    wl1 = jax.random.normal(ks[5], (H2, W2, C2, D1), jnp.float32) * 0.05  # 288 -> 256
    bl1 = jax.random.normal(ks[6], (D1,), jnp.float32) * 0.05
    wl2 = jax.random.normal(ks[7], (D1, 1), jnp.float32) * 0.05           # 256 -> 1
    bl2 = jax.random.normal(ks[8], (1,), jnp.float32) * 0.05

    qvalues = dqn_forward(x, w1, b1, w2, b2, wl1, bl1, wl2, bl2)
    qvalues = jax.block_until_ready(qvalues)

    ref = dqn_forward_ref(x, w1, b1, w2, b2, wl1, bl1, wl2, bl2)
    assert qvalues.shape == (B, 1) and qvalues.dtype == jnp.float32
    rel_err = float(jnp.max(jnp.abs(qvalues - ref)) /
                    (jnp.max(jnp.abs(ref)) + 1e-6))
    assert rel_err < 2e-3, (rel_err, qvalues, ref)
    print("KERNEL_OK")
</pallas_src>

<mosaic_0001>
module attributes {stable_mosaic.version = 11 : i64} {
  func.func @kernel(%arg0: i32, %arg1: memref<56x144xbf16, #tpu.memory_space<vmem>>, %arg2: memref<144x128xbf16, #tpu.memory_space<vmem>>, %arg3: memref<1x128xf32, #tpu.memory_space<vmem>>, %arg4: memref<384x96xbf16, #tpu.memory_space<vmem>>, %arg5: memref<1x96xf32, #tpu.memory_space<vmem>>, %arg6: memref<288x256xbf16, #tpu.memory_space<vmem>>, %arg7: memref<1x256xf32, #tpu.memory_space<vmem>>, %arg8: memref<1x256xf32, #tpu.memory_space<vmem>>, %arg9: memref<1x1xf32, #tpu.memory_space<vmem>>, %arg10: memref<8x1xf32, #tpu.memory_space<vmem>>, %arg11: memref<56x128xf32, #tpu.memory_space<vmem>>) attributes {dimension_semantics = [#tpu.dimension_semantics<parallel>], iteration_bounds = array<i64: 2>, scalar_prefetch = 0 : i64, scratch_operands = 1 : i64, tpu.core_type = #tpu.core_type<tc>, window_params = [{transform_indices = @transform_0, window_bounds = array<i64: 56, 144>}, {pipeline_mode = #tpu.pipeline_mode<synchronous>, transform_indices = @transform_1, window_bounds = array<i64: 144, 128>}, {pipeline_mode = #tpu.pipeline_mode<synchronous>, transform_indices = @transform_2, window_bounds = array<i64: 1, 128>}, {pipeline_mode = #tpu.pipeline_mode<synchronous>, transform_indices = @transform_3, window_bounds = array<i64: 384, 96>}, {pipeline_mode = #tpu.pipeline_mode<synchronous>, transform_indices = @transform_4, window_bounds = array<i64: 1, 96>}, {pipeline_mode = #tpu.pipeline_mode<synchronous>, transform_indices = @transform_5, window_bounds = array<i64: 288, 256>}, {pipeline_mode = #tpu.pipeline_mode<synchronous>, transform_indices = @transform_6, window_bounds = array<i64: 1, 256>}, {pipeline_mode = #tpu.pipeline_mode<synchronous>, transform_indices = @transform_7, window_bounds = array<i64: 1, 256>}, {pipeline_mode = #tpu.pipeline_mode<synchronous>, transform_indices = @transform_8, window_bounds = array<i64: 1, 1>}, {transform_indices = @transform_9, window_bounds = array<i64: 8, 1>}]} {
    %c0 = arith.constant 0 : index
    %c0_0 = arith.constant 0 : index
    %0 = vector.load %arg1[%c0, %c0_0] : memref<56x144xbf16, #tpu.memory_space<vmem>>, vector<56x144xbf16>
    %c0_1 = arith.constant 0 : index
    %c0_2 = arith.constant 0 : index
    %1 = vector.load %arg2[%c0_1, %c0_2] : memref<144x128xbf16, #tpu.memory_space<vmem>>, vector<144x128xbf16>
    %cst = arith.constant dense<0.000000e+00> : vector<56x128xf32>
    %2 = tpu.matmul %0, %1, %cst {dimension_numbers = #tpu.dot_dimension_numbers<[1], [0], [0], [1], [0, 0, 1, 1], [], []>} : vector<56x144xbf16>, vector<144x128xbf16>, vector<56x128xf32> -> vector<56x128xf32>
    %c0_3 = arith.constant 0 : index
    %c0_4 = arith.constant 0 : index
    %3 = vector.load %arg3[%c0_3, %c0_4] : memref<1x128xf32, #tpu.memory_space<vmem>>, vector<1x128xf32>
    %4 = vector.broadcast %3 : vector<1x128xf32> to vector<56x128xf32>
    %5 = arith.addf %2, %4 : vector<56x128xf32>
    %cst_5 = arith.constant 0.000000e+00 : f32
    %6 = vector.broadcast %cst_5 : f32 to vector<56x128xf32>
    %7 = arith.maximumf %5, %6 : vector<56x128xf32>
    %c0_6 = arith.constant 0 : index
    %c0_7 = arith.constant 0 : index
    %8 = vector.load %arg11[%c0_6, %c0_7] : memref<56x128xf32, #tpu.memory_space<vmem>>, vector<56x128xf32>
    tpu.vector_store %arg11[%c0_6, %c0_7], %7 {strides = array<i32>} : memref<56x128xf32, #tpu.memory_space<vmem>>, vector<56x128xf32>,
    %c0_8 = arith.constant 0 : index
    %c0_9 = arith.constant 0 : index
    %9 = vector.load %arg7[%c0_8, %c0_9] : memref<1x256xf32, #tpu.memory_space<vmem>>, vector<1x256xf32>
    %c0_10 = arith.constant 0 : index
    %c0_11 = arith.constant 0 : index
    %10 = vector.load %arg5[%c0_10, %c0_11] : memref<1x96xf32, #tpu.memory_space<vmem>>, vector<1x96xf32>
    %c0_12 = arith.constant 0 : index
    %c0_13 = arith.constant 0 : index
    %11 = vector.load %arg11[%c0_12, %c0_13] : memref<56x128xf32, #tpu.memory_space<vmem>>, vector<8x128xf32>
    %12 = arith.truncf %11 : vector<8x128xf32> to vector<8x128xbf16>
    %c0_14 = arith.constant 0 : index
    %c0_15 = arith.constant 0 : index
    %13 = vector.load %arg4[%c0_14, %c0_15] : memref<384x96xbf16, #tpu.memory_space<vmem>>, vector<128x96xbf16>
    %cst_16 = arith.constant dense<0.000000e+00> : vector<8x96xf32>
    %14 = tpu.matmul %12, %13, %cst_16 {dimension_numbers = #tpu.dot_dimension_numbers<[1], [0], [0], [1], [0, 0, 1, 1], [], []>} : vector<8x128xbf16>, vector<128x96xbf16>, vector<8x96xf32> -> vector<8x96xf32>
    %15 = vector.broadcast %10 : vector<1x96xf32> to vector<8x96xf32>
    %16 = arith.addf %15, %14 : vector<8x96xf32>
    %c8 = arith.constant 8 : index
    %c0_17 = arith.constant 0 : index
    %17 = vector.load %arg11[%c8, %c0_17] : memref<56x128xf32, #tpu.memory_space<vmem>>, vector<8x128xf32>
    %18 = arith.truncf %17 : vector<8x128xf32> to vector<8x128xbf16>
    %c128 = arith.constant 128 : index
    %c0_18 = arith.constant 0 : index
    %19 = vector.load %arg4[%c128, %c0_18] : memref<384x96xbf16, #tpu.memory_space<vmem>>, vector<128x96xbf16>
    %cst_19 = arith.constant dense<0.000000e+00> : vector<8x96xf32>
    %20 = tpu.matmul %18, %19, %cst_19 {dimension_numbers = #tpu.dot_dimension_numbers<[1], [0], [0], [1], [0, 0, 1, 1], [], []>} : vector<8x128xbf16>, vector<128x96xbf16>, vector<8x96xf32> -> vector<8x96xf32>
    %21 = arith.addf %16, %20 : vector<8x96xf32>
    %c16 = arith.constant 16 : index
    %c0_20 = arith.constant 0 : index
    %22 = vector.load %arg11[%c16, %c0_20] : memref<56x128xf32, #tpu.memory_space<vmem>>, vector<8x128xf32>
    %23 = arith.truncf %22 : vector<8x128xf32> to vector<8x128xbf16>
    %c256 = arith.constant 256 : index
    %c0_21 = arith.constant 0 : index
    %24 = vector.load %arg4[%c256, %c0_21] : memref<384x96xbf16, #tpu.memory_space<vmem>>, vector<128x96xbf16>
    %cst_22 = arith.constant dense<0.000000e+00> : vector<8x96xf32>
    %25 = tpu.matmul %23, %24, %cst_22 {dimension_numbers = #tpu.dot_dimension_numbers<[1], [0], [0], [1], [0, 0, 1, 1], [], []>} : vector<8x128xbf16>, vector<128x96xbf16>, vector<8x96xf32> -> vector<8x96xf32>
    %26 = arith.addf %21, %25 : vector<8x96xf32>
    %cst_23 = arith.constant 0.000000e+00 : f32
    %27 = vector.broadcast %cst_23 : f32 to vector<8x96xf32>
    %28 = arith.maximumf %26, %27 : vector<8x96xf32>
    %29 = arith.truncf %28 : vector<8x96xf32> to vector<8x96xbf16>
    %c0_24 = arith.constant 0 : index
    %c0_25 = arith.constant 0 : index
    %30 = vector.load %arg6[%c0_24, %c0_25] : memref<288x256xbf16, #tpu.memory_space<vmem>>, vector<96x256xbf16>
    %cst_26 = arith.constant dense<0.000000e+00> : vector<8x256xf32>
    %31 = tpu.matmul %29, %30, %cst_26 {dimension_numbers = #tpu.dot_dimension_numbers<[1], [0], [0], [1], [0, 0, 1, 1], [], []>} : vector<8x96xbf16>, vector<96x256xbf16>, vector<8x256xf32> -> vector<8x256xf32>
    %32 = vector.broadcast %9 : vector<1x256xf32> to vector<8x256xf32>
    %33 = arith.addf %32, %31 : vector<8x256xf32>
    %c0_27 = arith.constant 0 : index
    %c0_28 = arith.constant 0 : index
    %34 = vector.load %arg5[%c0_27, %c0_28] : memref<1x96xf32, #tpu.memory_space<vmem>>, vector<1x96xf32>
    %c16_29 = arith.constant 16 : index
    %c0_30 = arith.constant 0 : index
    %35 = vector.load %arg11[%c16_29, %c0_30] : memref<56x128xf32, #tpu.memory_space<vmem>>, vector<8x128xf32>
    %36 = arith.truncf %35 : vector<8x128xf32> to vector<8x128xbf16>
    %c0_31 = arith.constant 0 : index
    %c0_32 = arith.constant 0 : index
    %37 = vector.load %arg4[%c0_31, %c0_32] : memref<384x96xbf16, #tpu.memory_space<vmem>>, vector<128x96xbf16>
    %cst_33 = arith.constant dense<0.000000e+00> : vector<8x96xf32>
    %38 = tpu.matmul %36, %37, %cst_33 {dimension_numbers = #tpu.dot_dimension_numbers<[1], [0], [0], [1], [0, 0, 1, 1], [], []>} : vector<8x128xbf16>, vector<128x96xbf16>, vector<8x96xf32> -> vector<8x96xf32>
    %39 = vector.broadcast %34 : vector<1x96xf32> to vector<8x96xf32>
    %40 = arith.addf %39, %38 : vector<8x96xf32>
    %c24 = arith.constant 24 : index
    %c0_34 = arith.constant 0 : index
    %41 = vector.load %arg11[%c24, %c0_34] : memref<56x128xf32, #tpu.memory_space<vmem>>, vector<8x128xf32>
    %42 = arith.truncf %41 : vector<8x128xf32> to vector<8x128xbf16>
    %c128_35 = arith.constant 128 : index
    %c0_36 = arith.constant 0 : index
    %43 = vector.load %arg4[%c128_35, %c0_36] : memref<384x96xbf16, #tpu.memory_space<vmem>>, vector<128x96xbf16>
    %cst_37 = arith.constant dense<0.000000e+00> : vector<8x96xf32>
    %44 = tpu.matmul %42, %43, %cst_37 {dimension_numbers = #tpu.dot_dimension_numbers<[1], [0], [0], [1], [0, 0, 1, 1], [], []>} : vector<8x128xbf16>, vector<128x96xbf16>, vector<8x96xf32> -> vector<8x96xf32>
    %45 = arith.addf %40, %44 : vector<8x96xf32>
    %c32 = arith.constant 32 : index
    %c0_38 = arith.constant 0 : index
    %46 = vector.load %arg11[%c32, %c0_38] : memref<56x128xf32, #tpu.memory_space<vmem>>, vector<8x128xf32>
    %47 = arith.truncf %46 : vector<8x128xf32> to vector<8x128xbf16>
    %c256_39 = arith.constant 256 : index
    %c0_40 = arith.constant 0 : index
    %48 = vector.load %arg4[%c256_39, %c0_40] : memref<384x96xbf16, #tpu.memory_space<vmem>>, vector<128x96xbf16>
    %cst_41 = arith.constant dense<0.000000e+00> : vector<8x96xf32>
    %49 = tpu.matmul %47, %48, %cst_41 {dimension_numbers = #tpu.dot_dimension_numbers<[1], [0], [0], [1], [0, 0, 1, 1], [], []>} : vector<8x128xbf16>, vector<128x96xbf16>, vector<8x96xf32> -> vector<8x96xf32>
    %50 = arith.addf %45, %49 : vector<8x96xf32>
    %cst_42 = arith.constant 0.000000e+00 : f32
    %51 = vector.broadcast %cst_42 : f32 to vector<8x96xf32>
    %52 = arith.maximumf %50, %51 : vector<8x96xf32>
    %53 = arith.truncf %52 : vector<8x96xf32> to vector<8x96xbf16>
    %c96 = arith.constant 96 : index
    %c0_43 = arith.constant 0 : index
    %54 = vector.load %arg6[%c96, %c0_43] : memref<288x256xbf16, #tpu.memory_space<vmem>>, vector<96x256xbf16>
    %cst_44 = arith.constant dense<0.000000e+00> : vector<8x256xf32>
    %55 = tpu.matmul %53, %54, %cst_44 {dimension_numbers = #tpu.dot_dimension_numbers<[1], [0], [0], [1], [0, 0, 1, 1], [], []>} : vector<8x96xbf16>, vector<96x256xbf16>, vector<8x256xf32> -> vector<8x256xf32>
    %56 = arith.addf %33, %55 : vector<8x256xf32>
    %c0_45 = arith.constant 0 : index
    %c0_46 = arith.constant 0 : index
    %57 = vector.load %arg5[%c0_45, %c0_46] : memref<1x96xf32, #tpu.memory_space<vmem>>, vector<1x96xf32>
    %c32_47 = arith.constant 32 : index
    %c0_48 = arith.constant 0 : index
    %58 = vector.load %arg11[%c32_47, %c0_48] : memref<56x128xf32, #tpu.memory_space<vmem>>, vector<8x128xf32>
    %59 = arith.truncf %58 : vector<8x128xf32> to vector<8x128xbf16>
    %c0_49 = arith.constant 0 : index
    %c0_50 = arith.constant 0 : index
    %60 = vector.load %arg4[%c0_49, %c0_50] : memref<384x96xbf16, #tpu.memory_space<vmem>>, vector<128x96xbf16>
    %cst_51 = arith.constant dense<0.000000e+00> : vector<8x96xf32>
    %61 = tpu.matmul %59, %60, %cst_51 {dimension_numbers = #tpu.dot_dimension_numbers<[1], [0], [0], [1], [0, 0, 1, 1], [], []>} : vector<8x128xbf16>, vector<128x96xbf16>, vector<8x96xf32> -> vector<8x96xf32>
    %62 = vector.broadcast %57 : vector<1x96xf32> to vector<8x96xf32>
    %63 = arith.addf %62, %61 : vector<8x96xf32>
    %c40 = arith.constant 40 : index
    %c0_52 = arith.constant 0 : index
    %64 = vector.load %arg11[%c40, %c0_52] : memref<56x128xf32, #tpu.memory_space<vmem>>, vector<8x128xf32>
    %65 = arith.truncf %64 : vector<8x128xf32> to vector<8x128xbf16>
    %c128_53 = arith.constant 128 : index
    %c0_54 = arith.constant 0 : index
    %66 = vector.load %arg4[%c128_53, %c0_54] : memref<384x96xbf16, #tpu.memory_space<vmem>>, vector<128x96xbf16>
    %cst_55 = arith.constant dense<0.000000e+00> : vector<8x96xf32>
    %67 = tpu.matmul %65, %66, %cst_55 {dimension_numbers = #tpu.dot_dimension_numbers<[1], [0], [0], [1], [0, 0, 1, 1], [], []>} : vector<8x128xbf16>, vector<128x96xbf16>, vector<8x96xf32> -> vector<8x96xf32>
    %68 = arith.addf %63, %67 : vector<8x96xf32>
    %c48 = arith.constant 48 : index
    %c0_56 = arith.constant 0 : index
    %69 = vector.load %arg11[%c48, %c0_56] : memref<56x128xf32, #tpu.memory_space<vmem>>, vector<8x128xf32>
    %70 = arith.truncf %69 : vector<8x128xf32> to vector<8x128xbf16>
    %c256_57 = arith.constant 256 : index
    %c0_58 = arith.constant 0 : index
    %71 = vector.load %arg4[%c256_57, %c0_58] : memref<384x96xbf16, #tpu.memory_space<vmem>>, vector<128x96xbf16>
    %cst_59 = arith.constant dense<0.000000e+00> : vector<8x96xf32>
    %72 = tpu.matmul %70, %71, %cst_59 {dimension_numbers = #tpu.dot_dimension_numbers<[1], [0], [0], [1], [0, 0, 1, 1], [], []>} : vector<8x128xbf16>, vector<128x96xbf16>, vector<8x96xf32> -> vector<8x96xf32>
    %73 = arith.addf %68, %72 : vector<8x96xf32>
    %cst_60 = arith.constant 0.000000e+00 : f32
    %74 = vector.broadcast %cst_60 : f32 to vector<8x96xf32>
    %75 = arith.maximumf %73, %74 : vector<8x96xf32>
    %76 = arith.truncf %75 : vector<8x96xf32> to vector<8x96xbf16>
    %c192 = arith.constant 192 : index
    %c0_61 = arith.constant 0 : index
    %77 = vector.load %arg6[%c192, %c0_61] : memref<288x256xbf16, #tpu.memory_space<vmem>>, vector<96x256xbf16>
    %cst_62 = arith.constant dense<0.000000e+00> : vector<8x256xf32>
    %78 = tpu.matmul %76, %77, %cst_62 {dimension_numbers = #tpu.dot_dimension_numbers<[1], [0], [0], [1], [0, 0, 1, 1], [], []>} : vector<8x96xbf16>, vector<96x256xbf16>, vector<8x256xf32> -> vector<8x256xf32>
    %79 = arith.addf %56, %78 : vector<8x256xf32>
    %cst_63 = arith.constant 0.000000e+00 : f32
    %80 = vector.broadcast %cst_63 : f32 to vector<8x256xf32>
    %81 = arith.maximumf %79, %80 : vector<8x256xf32>
    %c0_64 = arith.constant 0 : index
    %c0_65 = arith.constant 0 : index
    %82 = vector.load %arg8[%c0_64, %c0_65] : memref<1x256xf32, #tpu.memory_space<vmem>>, vector<1x256xf32>
    %83 = vector.broadcast %82 : vector<1x256xf32> to vector<8x256xf32>
    %84 = arith.mulf %81, %83 : vector<8x256xf32>
    %cst_66 = arith.constant dense<0.000000e+00> : vector<8xf32>
    %85 = vector.multi_reduction <add>, %84, %cst_66 [1] : vector<8x256xf32> to vector<8xf32>
    %86 = vector.shape_cast %85 : vector<8xf32> to vector<8x1xf32>
    %c0_67 = arith.constant 0 : index
    %c0_68 = arith.constant 0 : index
    %87 = vector.load %arg9[%c0_67, %c0_68] : memref<1x1xf32, #tpu.memory_space<vmem>>, vector<1x1xf32>
    %88 = vector.broadcast %87 : vector<1x1xf32> to vector<8x1xf32>
    %89 = arith.addf %86, %88 : vector<8x1xf32>
    %c0_69 = arith.constant 0 : index
    %c0_70 = arith.constant 0 : index
    %90 = vector.load %arg10[%c0_69, %c0_70] : memref<8x1xf32, #tpu.memory_space<vmem>>, vector<8x1xf32>
    tpu.vector_store %arg10[%c0_69, %c0_70], %89 {strides = array<i32>} : memref<8x1xf32, #tpu.memory_space<vmem>>, vector<8x1xf32>,
    return
  }
  func.func @transform_0(%arg0: i32) -> (i32, i32) {
    %c0_i32 = arith.constant 0 : i32
    %c0_i32_0 = arith.constant 0 : i32
    return %arg0, %c0_i32 : i32, i32
  }
  func.func @transform_1(%arg0: i32) -> (i32, i32) {
    %c0_i32 = arith.constant 0 : i32
    %c0_i32_0 = arith.constant 0 : i32
    %c0_i32_1 = arith.constant 0 : i32
    return %c0_i32, %c0_i32_0 : i32, i32
  }
  func.func @transform_2(%arg0: i32) -> (i32, i32) {
    %c0_i32 = arith.constant 0 : i32
    %c0_i32_0 = arith.constant 0 : i32
    %c0_i32_1 = arith.constant 0 : i32
    return %c0_i32, %c0_i32_0 : i32, i32
  }
  func.func @transform_3(%arg0: i32) -> (i32, i32) {
    %c0_i32 = arith.constant 0 : i32
    %c0_i32_0 = arith.constant 0 : i32
    %c0_i32_1 = arith.constant 0 : i32
    return %c0_i32, %c0_i32_0 : i32, i32
  }
  func.func @transform_4(%arg0: i32) -> (i32, i32) {
    %c0_i32 = arith.constant 0 : i32
    %c0_i32_0 = arith.constant 0 : i32
    %c0_i32_1 = arith.constant 0 : i32
    return %c0_i32, %c0_i32_0 : i32, i32
  }
  func.func @transform_5(%arg0: i32) -> (i32, i32) {
    %c0_i32 = arith.constant 0 : i32
    %c0_i32_0 = arith.constant 0 : i32
    %c0_i32_1 = arith.constant 0 : i32
    return %c0_i32, %c0_i32_0 : i32, i32
  }
  func.func @transform_6(%arg0: i32) -> (i32, i32) {
    %c0_i32 = arith.constant 0 : i32
    %c0_i32_0 = arith.constant 0 : i32
    %c0_i32_1 = arith.constant 0 : i32
    return %c0_i32, %c0_i32_0 : i32, i32
  }
  func.func @transform_7(%arg0: i32) -> (i32, i32) {
    %c0_i32 = arith.constant 0 : i32
    %c0_i32_0 = arith.constant 0 : i32
    %c0_i32_1 = arith.constant 0 : i32
    return %c0_i32, %c0_i32_0 : i32, i32
  }
  func.func @transform_8(%arg0: i32) -> (i32, i32) {
    %c0_i32 = arith.constant 0 : i32
    %c0_i32_0 = arith.constant 0 : i32
    %c0_i32_1 = arith.constant 0 : i32
    return %c0_i32, %c0_i32_0 : i32, i32
  }
  func.func @transform_9(%arg0: i32) -> (i32, i32) {
    %c0_i32 = arith.constant 0 : i32
    %c0_i32_0 = arith.constant 0 : i32
    return %arg0, %c0_i32 : i32, i32
  }
}

</mosaic_0001>

<bundles_post_ra>
// kernel: tpu_custom_call.1
= control target key start
LH: loop header
LB: loop body
LE: loop exit
PB: predicated region body
PF: predicated region fallthrough
CT: control target
= control target key end

     0   :  { %s1737_s11 = smov 0   ;;  %s2240_s0 = inlined_call_operand.vmem [shape: bf16[112,144], index: 0, kind: input, shape index: {}]   ;;  %s2241_s1 = inlined_call_operand.vmem [shape: bf16[144,128], index: 1, kind: input, shape index: {}]   ;;  %s2242_s2 = inlined_call_operand.vmem [shape: f32[1,128], index: 2, kind: input, shape index: {}]   ;;  %s2243_s3 = inlined_call_operand.vmem [shape: bf16[384,96], index: 3, kind: input, shape index: {}]   ;;  %s2244_s4 = inlined_call_operand.vmem [shape: f32[1,96], index: 4, kind: input, shape index: {}]   ;;  %s2245_s5 = inlined_call_operand.vmem [shape: bf16[288,256], index: 5, kind: input, shape index: {}]   ;;  %s2246_s6 = inlined_call_operand.vmem [shape: f32[1,256], index: 6, kind: input, shape index: {}]   ;;  %s2247_s7 = inlined_call_operand.vmem [shape: f32[1,256], index: 7, kind: input, shape index: {}]   ;;  %s2248_s8 = inlined_call_operand.<no memory space> [shape: f32[1,1], index: 8, kind: input, shape index: {}]   ;;  %s2249_s9 = inlined_call_operand.vmem [shape: f32[16,1], index: 9, kind: output, shape index: {}]  }
   0x1   :  { %v14_v0 = vstv %s2248_s8 }
   0x2   :  { %15 = vst [vmem:[#allocation3] sm:$0x1] %v14_v0 }
   0x3 LB: > { %s1743_s12 = sadd.s32 4294967295, %s1682_s11   ;;  %p1273_p0 = scmp.ge.s32.totalorder %s1682_s11, 1  ;;  %s1682_s11 = sphi %s1737_s11, %s21_s11  }
   0x4   : > { %p291_p1 = scmp.lt.s32.totalorder %s1682_s11, 3 }
   0x6   : > { %p292_p2 = pnand %p1273_p0, %p291_p1 }
   0x7   : > { %s327_s8 = smul.u32 (!%p292_p2), 7, %s1743_s12  ;;  %p334_p4 = scmp.lt.s32.totalorder (!%p292_p2), %s1743_s12, 1 }
   0x8   : > { %295 = sbr.rel (%p292_p2) target bundleno = 902 (0x386), region = 56 }
   0x9   : > { %p328_p3 = scmp.lt.s32.totalorder (!%p292_p2), %s327_s8, 13 }
   0xd   : > { %v1603_v1 = vld [vmem:[%s2241_s1 + $0x38] sm:$0xff]  ;;  %v1602_v2 = vld [vmem:[%s2241_s1 + $0x30] sm:$0xff]  ;;  %v1604_v3 = vld [vmem:[%s2241_s1 + $0x40] sm:$0xff]  ;;  %s2251_s8 = smov (!%p328_p3, %s327_s8), 13  ;;  %vm455_vm0 = vcmask 130048   ;;  %vm857_vm1 = vcmask 785408  }
   0xe   : > { %468 = vmatpush.bf16.msra.mxu0 %v1603_v1  ;;  %503 = vmatpush.bf16.msra.mxu1 %v1604_v3  ;;  %v1601_v4 = vld [vmem:[%s2241_s1 + $0x28] sm:$0xff]  ;;  %s1589_s21 = sshll.u32 %s2251_s8, 3  ;;  %v1600_v8 = vld [vmem:[%s2241_s1 + $0x20] sm:$0xff]  ;;  %v1599_v9 = vld [vmem:[%s2241_s1 + $0x18] sm:$0xff]  ;;  %s2253_s12 = smov (!%p334_p4, %s1743_s12), 1  ;;  %vm1214_vm2 = vcmask 7168  }
   0xf   : > { %s1763_s24 = scalar_lea.vmem %s2240_s0, %s1589_s21  ;;  %v1777_v10 = vld [vmem:[%s2243_s3 + $0x38] sm:$0xff]  ;;  %v1598_v11 = vld [vmem:[%s2241_s1 + $0x10] sm:$0xff]  ;;  %v1597_v17 = vld [vmem:[%s2241_s1 + $0x8] sm:$0xff]  ;;  %s1276_s17 = sshll.u32 %s2253_s12, 3 }
  0x10   : > { %v1590_v5 = vld [vmem:[%s1763_s24 + $0x4] sm:$0xf]  ;;  %v1281_v6 = vld [vmem:[%s1763_s24 + $0x8] sm:$0xf0]  ;;  %606 = vmatpush.bf16.msra.mxu2 %v1777_v10  ;;  %v1786_v12 = vld [vmem:[%s2243_s3 + $0x30] sm:$0xff]  ;;  %s337_s20 = scalar_lea.vmem %s2249_s9, %s1276_s17 }
  0x11   : > { %v1284_v7 = vor.u32 %v1590_v5, %v1281_v6  ;;  %v1791_v13 = vld [vmem:[%s2243_s3 + $0x78] sm:$0xff]  ;;  %v1592_v14 = vld [vmem:[%s1763_s24 + $0x14] sm:$0xf]  ;;  %v1808_v19 = vld [vmem:[%s2243_s3 + $0x28] sm:$0xff] }
  0x12   : > { %469 = vmatpush.bf16.msra.mxu0 %v1602_v2  ;;  %v1289_v15 = vld [vmem:[%s1763_s24 + $0x18] sm:$0xf0]  ;;  %689 = vmatpush.bf16.msra.mxu3 %v1791_v13  ;;  %v1799_v16 = vld [vmem:[%s2243_s3 + $0x70] sm:$0xff]  ;;  %v1596_v20 = vld [vmem:[%s2241_s1] sm:$0xff] }
  0x13   : > { %1337 = vmatmul.msk.bf16.vlgmr.msra.gmra.mxu1 %vm455_vm0, %v1284_v7  ;;  %v1292_v18 = vor.u32 %v1592_v14, %v1289_v15  ;;  %v1279_v21 = vld [vmem:[%s1763_s24] sm:$0xf]  ;;  %v1591_v22 = vld [vmem:[%s1763_s24 + $0x4] sm:$0xf0]  ;;  %v1827_v25 = vld [vmem:[%s2243_s3 + $0x18] sm:$0xff] }
  0x14   : > { %607 = vmatpush.bf16.msra.mxu2 %v1786_v12  ;;  %v1821_v23 = vld [vmem:[%s2243_s3 + $0x20] sm:$0xff]  ;;  %v1280_v24 = vor.u32 %v1591_v22, %v1279_v21  ;;  %v1834_v26 = vld [vmem:[%s2243_s3 + $0x10] sm:$0xff]  ;;  %v1841_v27 = vld [vmem:[%s2243_s3 + $0x8] sm:$0xff] }
  0x15   : > { %v1287_v28 = vld [vmem:[%s1763_s24 + $0x10] sm:$0xf]  ;;  %v1593_v29 = vld [vmem:[%s1763_s24 + $0x14] sm:$0xf0]  ;;  %v1849_v30 = vld [vmem:[%s2243_s3] sm:$0xff] }
  0x16   : > { %470 = vmatpush.bf16.msra.mxu0 %v1601_v4  ;;  %690 = vmatpush.bf16.msra.mxu3 %v1799_v16  ;;  %v1288_v31 = vor.u32 %v1593_v29, %v1287_v28  ;;  %v1618_v32 = vld [vmem:[%s2243_s3 + $0x68] sm:$0xff]  ;;  %v1858_v33 = vld [vmem:[%s2243_s3 + $0xb8] sm:$0xff]  ;;  %v1617_v34 = vld [vmem:[%s2243_s3 + $0x60] sm:$0xff] }
  0x17   : > { %v1867_v35 = vld [vmem:[%s2243_s3 + $0xb0] sm:$0xff]  ;;  %v1295_v36 = vld [vmem:[%s1763_s24 + $0x20] sm:$0xf]  ;;  %v1595_v37 = vld [vmem:[%s1763_s24 + $0x24] sm:$0xf0] }
  0x18   : > { %608 = vmatpush.bf16.msra.mxu2 %v1808_v19  ;;  %v1296_v38 = vor.u32 %v1595_v37, %v1295_v36  ;;  %v1616_v39 = vld [vmem:[%s2243_s3 + $0x58] sm:$0xff]  ;;  %v1878_v40 = vld [vmem:[%s2243_s3 + $0xa8] sm:$0xff]  ;;  %v1615_v41 = vld [vmem:[%s2243_s3 + $0x50] sm:$0xff] }
  0x19   : > { %v1887_v42 = vld [vmem:[%s2243_s3 + $0xa0] sm:$0xff]  ;;  %v1614_v43 = vld [vmem:[%s2243_s3 + $0x48] sm:$0xff]  ;;  %v1896_v44 = vld [vmem:[%s2243_s3 + $0x98] sm:$0xff] }
  0x1a   : > { %471 = vmatpush.bf16.msra.mxu0 %v1600_v8  ;;  %691 = vmatpush.bf16.msra.mxu3 %v1618_v32  ;;  %v1613_v45 = vld [vmem:[%s2243_s3 + $0x40] sm:$0xff]  ;;  %v1905_v46 = vld [vmem:[%s2243_s3 + $0x90] sm:$0xff]  ;;  %v1622_v50 = vld [vmem:[%s2243_s3 + $0x88] sm:$0xff] }
  0x1b   : > { %v1908_v47 = vld [vmem:[%s1763_s24 + $0x30] sm:$0xff]  ;;  %v1919_v51 = vld [vmem:[%s2243_s3 + $0x80] sm:$0xff]  ;;  %v1297_v56 = vld [vmem:[%s1763_s24 + $0x28] sm:$0xf0] }
  0x1c   : > { %609 = vmatpush.bf16.msra.mxu2 %v1821_v23  ;;  %v387_v48 = vunpack.c.l.b16 %v1908_v47  ;;  %v1926_v53 = vld [vmem:[%s2242_s2] ss:$0 sm:$0xff]  ;;  %v1594_v55 = vld [vmem:[%s1763_s24 + $0x24] sm:$0xf]  ;;  %v1463_v29 = vld [vmem:[%s2245_s5 + $0x30] sm:$0xf] }
  0x1d   : > { %v1300_v58 = vor.u32 %v1594_v55, %v1297_v56  ;;  %v1471_v21 = vld [vmem:[%s2245_s5 + $0x40] sm:$0xf]  ;;  %v1465_v55 = vld [vmem:[%s2245_s5 + $0x38] sm:$0xf0] }
  0x1e   : > { %472 = vmatpush.bf16.msra.mxu0 %v1599_v9  ;;  %692 = vmatpush.bf16.msra.mxu3 %v1617_v34  ;;  %v395_v49 = vpack.c.b16 %v387_v48, %v387_v48  ;;  %v1439_v48 = vld [vmem:[%s2245_s5] sm:$0xf] }
  0x20   : > { %610 = vmatpush.bf16.msra.mxu2 %v1827_v25 }
  0x22   : > { %473 = vmatpush.bf16.msra.mxu0 %v1598_v11  ;;  %693 = vmatpush.bf16.msra.mxu3 %v1616_v39 }
  0x23   : > { %1338 = vmatmul.msk.bf16.gmra.mxu1 %vm455_vm0, %v1292_v18  ;;  %v1479_v18 = vld [vmem:[%s2245_s5 + $0x50] sm:$0xf] }
  0x24   : > { %611 = vmatpush.bf16.msra.mxu2 %v1834_v26 }
  0x26   : > { %474 = vmatpush.bf16.msra.mxu0 %v1597_v17  ;;  %694 = vmatpush.bf16.msra.mxu3 %v1615_v41 }
  0x28   : > { %612 = vmatpush.bf16.msra.mxu2 %v1841_v27 }
  0x2a   : > { %475 = vmatpush.bf16.msra.mxu0 %v1596_v20  ;;  %695 = vmatpush.bf16.msra.mxu3 %v1614_v43  ;;  %v1640_v20 = vld [vmem:[%s2245_s5 + $0x54] sm:$0xf0] }
  0x2b   : > { %v1480_v22 = vor.u32 %v1640_v20, %v1479_v18  ;;  %v2044_v20 = vld [vmem:[%s2244_s4] ss:$0 sm:$0xff] }
  0x2c   : > { %613 = vmatpush.bf16.msra.mxu2 %v1849_v30 }
  0x2d   : > { %476 = vmatmul.bf16.vlgmr.msra.gmra.mxu0 %v1280_v24  ;;  %v1638_v24 = vld [vmem:[%s2245_s5 + $0x44] sm:$0xf0] }
  0x2e   : > { %910 = vmatpush.bf16.msrb.mxu0 %v1791_v13  ;;  %696 = vmatpush.bf16.msra.mxu3 %v1613_v45  ;;  %v1472_v28 = vor.u32 %v1638_v24, %v1471_v21 }
  0x30   : > { %769 = vmatpush.bf16.msrb.mxu2 %v1858_v33 }
  0x32   : > { %911 = vmatpush.bf16.msrb.mxu0 %v1799_v16  ;;  %863 = vmatpush.bf16.msrb.mxu3 %v1480_v22 }
  0x33   : > { %1339 = vmatmul.msk.bf16.gmra.mxu1 %vm455_vm0, %v1300_v58  ;;  %v1457_v58 = vld [vmem:[%s2245_s5 + $0x28] sm:$0xf0] }
  0x34   : > { %770 = vmatpush.bf16.msrb.mxu2 %v1867_v35 }
  0x36   : > { %912 = vmatpush.bf16.msrb.mxu0 %v1618_v32  ;;  %864 = vmatpush.bf16.msrb.mxu3 %v1472_v28 }
  0x38   : > { %771 = vmatpush.bf16.msrb.mxu2 %v1878_v40 }
  0x3a   : > { %913 = vmatpush.bf16.msrb.mxu0 %v1617_v34 }
  0x3c   : > { %772 = vmatpush.bf16.msrb.mxu2 %v1887_v42 }
  0x3d   : > { %481 = vmatmul.bf16.gmra.mxu0 %v1288_v31  ;;  %v1636_v31 = vld [vmem:[%s2245_s5 + $0x34] sm:$0xf0] }
  0x3e   : > { %914 = vmatpush.bf16.msrb.mxu0 %v1616_v39 }
  0x40   : > { %773 = vmatpush.bf16.msrb.mxu2 %v1896_v44 }
  0x42   : > { %915 = vmatpush.bf16.msrb.mxu0 %v1615_v41 }
  0x44   : > { %774 = vmatpush.bf16.msrb.mxu2 %v1905_v46 }
  0x46   : > { %916 = vmatpush.bf16.msrb.mxu0 %v1614_v43 }
  0x48   : > { %775 = vmatpush.bf16.msrb.mxu2 %v1622_v50 }
  0x4a   : > { %917 = vmatpush.bf16.msrb.mxu0 %v1613_v45 }
  0x4c   : > { %776 = vmatpush.bf16.msrb.mxu2 %v1919_v51 }
  0x4d   : > { %486 = vmatmul.bf16.gmra.mxu0 %v1296_v38  ;;  %v388_v38 = vunpack.c.h.b16 %v1908_v47 }
  0x4e   : > { %1061 = vmatpush.bf16.msra.mxu0 %v1791_v13 }
  0x4f   : > { %v396_v47 = vpack.c.b16 %v388_v38, %v388_v38 }
  0x51   : > { %1340 = vmatmul.msk.bf16.gmra.mxu1 %vm455_vm0, %v396_v47  ;;  %v1648_v47 = vld [vmem:[%s2245_s5 + $0x94] sm:$0xf0] }
  0x52   : > { %1062 = vmatpush.bf16.msra.mxu0 %v1799_v16 }
  0x56   : > { %1063 = vmatpush.bf16.msra.mxu0 %v1618_v32  ;;  %v1455_v32 = vld [vmem:[%s2245_s5 + $0x20] sm:$0xf] }
  0x5a   : > { %1064 = vmatpush.bf16.msra.mxu0 %v1617_v34  ;;  %v1634_v34 = vld [vmem:[%s2245_s5 + $0x24] sm:$0xf0] }
  0x5d   : > { %491 = vmatmul.bf16.gmra.mxu0 %v395_v49 }
  0x5e   : > { %1065 = vmatpush.bf16.msra.mxu0 %v1616_v39  ;;  %v1639_v39 = vld [vmem:[%s2245_s5 + $0x54] sm:$0xf] }
  0x62   : > { %1066 = vmatpush.bf16.msra.mxu0 %v1615_v41 }
  0x66   : > { %1067 = vmatpush.bf16.msra.mxu0 %v1614_v43  ;;  %v1632_v43 = vld [vmem:[%s2245_s5 + $0x14] sm:$0xf0] }
  0x6a   : > { %1068 = vmatpush.bf16.msra.mxu0 %v1613_v45  ;;  %v1637_v45 = vld [vmem:[%s2245_s5 + $0x44] sm:$0xf] }
  0x90   : > { %v505_v52 = vpop.f32.mrf.mxu1 }
  0x98   : > { %v507_v61 = vpop.f32.mrf.mxu1 }
  0xa0   : > { %v510_v4 = vpop.f32.mrf.mxu1 }
  0xa8   : > { %v512_v14 = vpop.f32.mrf.mxu1 }
  0xaa   : > { %v477_v54 = vpop.f32.mrf.mxu0 }
  0xab   : > { %v478_v57 = vadd.f32 %v1926_v53, %v477_v54  ;;  %v1635_v54 = vld [vmem:[%s2245_s5 + $0x34] sm:$0xf] }
  0xac   : > { %v1468_v56 = vor.u32 %v1635_v54, %v1465_v55  ;;  %v1531_v54 = vld [vmem:[%s2245_s5 + $0xb8] sm:$0xf0] }
  0xad   : > { %v506_v59 = vadd.f32 %v505_v52, %v478_v57  ;;  %v1633_v57 = vld [vmem:[%s2245_s5 + $0x24] sm:$0xf] }
  0xaf   : > { %v524_v60 = vmax.f32 %v506_v59, 0.0 }
  0xb1   : > { %v541_v62 = vpack.c.bf16 %v524_v60, %v524_v60  ;;  %v1460_v60 = vor.u32 %v1633_v57, %v1457_v58  ;;  %v1644_v57 = vld [vmem:[%s2245_s5 + $0x74] sm:$0xf0] }
  0xb2   : > { %v479_v63 = vpop.f32.mrf.mxu0 }
  0xb3   : > { %v480_v0 = vadd.f32 %v1926_v53, %v479_v63  ;;  %614 = vmatmul.bf16.vlgmr.msra.gmra.mxu2 %v541_v62  ;;  %v1449_v62 = vld [vmem:[%s2245_s5 + $0x18] sm:$0xf0] }
  0xb4   : > { %926 = vmatpush.bf16.msra.mxu2 %v1858_v33 }
  0xb5   : > { %v508_v1 = vadd.f32 %v507_v61, %v480_v0  ;;  %v1631_v61 = vld [vmem:[%s2245_s5 + $0x14] sm:$0xf] }
  0xb6   : > { %v1452_v63 = vor.u32 %v1631_v61, %v1449_v62 }
  0xb7   : > { %v525_v2 = vmax.f32 %v508_v1, 0.0  ;;  %v1629_v1 = vld [vmem:[%s2245_s5 + $0x4] sm:$0xf] }
  0xb8   : > { %927 = vmatpush.bf16.msra.mxu2 %v1867_v35 }
  0xb9   : > { %v624_v3 = vpack.c.bf16 %v525_v2, %v525_v2  ;;  %v1441_v2 = vld [vmem:[%s2245_s5 + $0x8] sm:$0xf0] }
  0xba   : > { %v482_v5 = vpop.f32.mrf.mxu0 }
  0xbb   : > { %v483_v6 = vadd.f32 %v1926_v53, %v482_v5  ;;  %697 = vmatmul.bf16.vlgmr.msra.gmra.mxu3 %v624_v3  ;;  %v1444_v3 = vor.u32 %v1629_v1, %v1441_v2  ;;  %v1647_v2 = vld [vmem:[%s2245_s5 + $0x94] sm:$0xf] }
  0xbc   : > { %928 = vmatpush.bf16.msra.mxu2 %v1878_v40 }
  0xbd   : > { %v511_v7 = vadd.f32 %v510_v4, %v483_v6  ;;  %v515_v4 = vpop.f32.mrf.mxu1 }
  0xbf   : > { %v526_v8 = vmax.f32 %v511_v7, 0.0 }
  0xc0   : > { %929 = vmatpush.bf16.msra.mxu2 %v1887_v42 }
  0xc1   : > { %v1938_v9 = vpack.c.bf16 %v526_v8, %v526_v8 }
  0xc2   : > { %v484_v11 = vpop.f32.mrf.mxu0 }
  0xc3   : > { %v485_v13 = vadd.f32 %v1926_v53, %v484_v11  ;;  %777 = vmatmul.bf16.vlgmr.msrb.gmra.mxu2 %v1938_v9 }
  0xc4   : > { %930 = vmatpush.bf16.msra.mxu2 %v1896_v44 }
  0xc5   : > { %v513_v15 = vadd.f32 %v512_v14, %v485_v13  ;;  %v517_v11 = vpop.f32.mrf.mxu1 }
  0xc7   : > { %v527_v16 = vmax.f32 %v513_v15, 0.0 }
  0xc8   : > { %931 = vmatpush.bf16.msra.mxu2 %v1905_v46 }
  0xc9   : > { %v909_v17 = vpack.c.bf16 %v527_v16, %v527_v16 }
  0xca   : > { %v487_v36 = vpop.f32.mrf.mxu0 }
  0xcb   : > { %918 = vmatmul.bf16.vlgmr.msrb.gmra.mxu0 %v909_v17  ;;  %v488_v0 = vadd.f32 %v1926_v53, %v487_v36  ;;  %v1529_v36 = vld [vmem:[%s2245_s5 + $0xb0] sm:$0xf] }
  0xcc   : > { %932 = vmatpush.bf16.msra.mxu2 %v1622_v50 }
  0xcd   : > { %v516_v5 = vadd.f32 %v515_v4, %v488_v0  ;;  %v1642_v0 = vld [vmem:[%s2245_s5 + $0x64] sm:$0xf0]  ;;  %v1515_v4 = vld [vmem:[%s2245_s5 + $0x98] sm:$0xf0] }
  0xcf   : > { %v528_v6 = vmax.f32 %v516_v5, 0.0  ;;  %v1518_v5 = vor.u32 %v1647_v2, %v1515_v4  ;;  %v1541_v2 = vld [vmem:[%s2245_s5 + $0xc8] sm:$0xf0]  ;;  %v538_v4 = vld [vmem:[%s2246_s6] sm:$0x3] }
  0xd0   : > { %933 = vmatpush.bf16.msra.mxu2 %v1919_v51 }
  0xd1   : > { %v2035_v8 = vpack.c.bf16 %v528_v6, %v528_v6  ;;  %v1645_v6 = vld [vmem:[%s2245_s5 + $0x84] sm:$0xf] }
  0xd2   : > { %v489_v37 = vpop.f32.mrf.mxu0 }
  0xd3   : > { %v490_v7 = vadd.f32 %v1926_v53, %v489_v37  ;;  %934 = vmatmul.bf16.vlgmr.msra.gmra.mxu2 %v2035_v8  ;;  %v1652_v37 = vld [vmem:[%s2245_s5 + $0xb4] sm:$0xf0] }
  0xd4   : > { %1077 = vmatpush.bf16.msrb.mxu2 %v1858_v33  ;;  %v1464_v33 = vor.u32 %v1636_v31, %v1463_v29  ;;  %v1530_v38 = vor.u32 %v1652_v37, %v1529_v36 }
  0xd5   : > { %v518_v13 = vadd.f32 %v517_v11, %v490_v7  ;;  %v1507_v7 = vld [vmem:[%s2245_s5 + $0x88] sm:$0xf0] }
  0xd6   : > { %865 = vmatpush.bf16.msrb.mxu3 %v1464_v33 }
  0xd7   : > { %v529_v14 = vmax.f32 %v518_v13, 0.0  ;;  %v1510_v13 = vor.u32 %v1645_v6, %v1507_v7 }
  0xd8   : > { %1078 = vmatpush.bf16.msrb.mxu2 %v1867_v35  ;;  %v1456_v35 = vor.u32 %v1634_v34, %v1455_v32 }
  0xd9   : > { %v1060_v16 = vpack.c.bf16 %v529_v14, %v529_v14 }
  0xda   : > { %866 = vmatpush.bf16.msrb.mxu3 %v1456_v35  ;;  %v1998_v49 = vpop.f32.mrf.mxu0 }
  0xdb   : > { %1069 = vmatmul.bf16.vlgmr.msra.gmra.mxu0 %v1060_v16 }
  0xdc   : > { %1079 = vmatpush.bf16.msrb.mxu2 %v1878_v40  ;;  %v1481_v40 = vld [vmem:[%s2245_s5 + $0x58] sm:$0xf0] }
  0xdd   : > { %v1484_v41 = vor.u32 %v1639_v39, %v1481_v40  ;;  %v493_v39 = vadd.f32 %v1926_v53, %v1998_v49  ;;  %v520_v40 = vpop.f32.mrf.mxu1  ;;  %v1513_v53 = vld [vmem:[%s2245_s5 + $0x90] sm:$0xf]  ;;  %v1505_v49 = vld [vmem:[%s2245_s5 + $0x80] sm:$0xf] }
  0xdf   : > { %876 = vmatpush.bf16.msrb.mxu1 %v1484_v41  ;;  %v521_v41 = vadd.f32 %v520_v40, %v493_v39  ;;  %v1662_v39 = vld [vmem:[%s2245_s5 + $0x104] sm:$0xf0]  ;;  %v1661_v40 = vld [vmem:[%s2245_s5 + $0x104] sm:$0xf] }
  0xe0   : > { %1080 = vmatpush.bf16.msrb.mxu2 %v1887_v42  ;;  %v1447_v42 = vld [vmem:[%s2245_s5 + $0x10] sm:$0xf] }
  0xe2   : > { %v494_v59 = vpop.f32.mrf.mxu0 }
  0xe3   : > { %v1649_v59 = vld [vmem:[%s2245_s5 + $0xa4] sm:$0xf] }
  0xe4   : > { %1081 = vmatpush.bf16.msrb.mxu2 %v1896_v44  ;;  %v1448_v44 = vor.u32 %v1632_v43, %v1447_v42  ;;  %v530_v42 = vmax.f32 %v521_v41, 0.0 }
  0xe6   : > { %867 = vmatpush.bf16.msrb.mxu3 %v1448_v44  ;;  %v1076_v43 = vpack.c.bf16 %v530_v42, %v530_v42  ;;  %v522_v44 = vpop.f32.mrf.mxu1  ;;  %v1573_v42 = vld [vmem:[%s2245_s5 + $0x108] sm:$0xf0] }
  0xe7   : > { %v1563_v44 = vld [vmem:[%s2245_s5 + $0xf0] sm:$0xf] }
  0xe8   : > { %1082 = vmatpush.bf16.msrb.mxu2 %v1905_v46  ;;  %v1473_v46 = vld [vmem:[%s2245_s5 + $0x48] sm:$0xf0] }
  0xec   : > { %1083 = vmatpush.bf16.msrb.mxu2 %v1622_v50  ;;  %v1476_v50 = vor.u32 %v1637_v45, %v1473_v46  ;;  %v1650_v45 = vld [vmem:[%s2245_s5 + $0xa4] sm:$0xf0] }
  0xee   : > { %877 = vmatpush.bf16.msrb.mxu1 %v1476_v50  ;;  %v1646_v50 = vld [vmem:[%s2245_s5 + $0x84] sm:$0xf0] }
  0xf0   : > { %1084 = vmatpush.bf16.msrb.mxu2 %v1919_v51  ;;  %v1630_v51 = vld [vmem:[%s2245_s5 + $0x4] sm:$0xf0] }
  0xf1   : > { %v1440_v52 = vor.u32 %v1630_v51, %v1439_v48  ;;  %v1514_v48 = vor.u32 %v1648_v47, %v1513_v53  ;;  %v1506_v51 = vor.u32 %v1646_v50, %v1505_v49  ;;  %v1565_v53 = vld [vmem:[%s2245_s5 + $0xf8] sm:$0xf0]  ;;  %v1658_v49 = vld [vmem:[%s2245_s5 + $0xe4] sm:$0xf0]  ;;  %v1657_v50 = vld [vmem:[%s2245_s5 + $0xe4] sm:$0xf] }
  0xf2   : > { %878 = vmatpush.bf16.msrb.mxu1 %v1468_v56  ;;  %v1497_v56 = vld [vmem:[%s2245_s5 + $0x70] sm:$0xf] }
  0xf3   : > { %868 = vmatpush.bf16.msrb.mxu3 %v1440_v52  ;;  %1085 = vmatmul.bf16.vlgmr.msrb.gmra.mxu2 %v1076_v43  ;;  %v1651_v52 = vld [vmem:[%s2245_s5 + $0xb4] sm:$0xf]  ;;  %v1498_v58 = vor.u32 %v1644_v57, %v1497_v56  ;;  %v1576_v43 = vor.u32 %v1661_v40, %v1573_v42  ;;  %v1656_v56 = vld [vmem:[%s2245_s5 + $0xd4] sm:$0xf0] }
  0xf4   : > { %v1534_v55 = vor.u32 %v1651_v52, %v1531_v54  ;;  %v1557_v52 = vld [vmem:[%s2245_s5 + $0xe8] sm:$0xf0]  ;;  %v1655_v57 = vld [vmem:[%s2245_s5 + $0xd4] sm:$0xf] }
  0xf5   : > { %v1560_v54 = vor.u32 %v1657_v50, %v1557_v52 }
  0xf6   : > { %879 = vmatpush.bf16.msrb.mxu1 %v1460_v60  ;;  %v1523_v60 = vld [vmem:[%s2245_s5 + $0xa8] sm:$0xf0] }
  0xf7   : > { %894 = vmatpush.bf16.msra.mxu3 %v1777_v10  ;;  %v1526_v62 = vor.u32 %v1649_v59, %v1523_v60  ;;  %v1549_v59 = vld [vmem:[%s2245_s5 + $0xd8] sm:$0xf0] }
  0xf8   : > { %v1552_v60 = vor.u32 %v1655_v57, %v1549_v59 }
  0xfa   : > { %880 = vmatpush.bf16.msrb.mxu1 %v1452_v63  ;;  %v1489_v63 = vld [vmem:[%s2245_s5 + $0x60] sm:$0xf] }
  0xfb   : > { %895 = vmatpush.bf16.msra.mxu3 %v1786_v12 }
  0xfe   : > { %881 = vmatpush.bf16.msrb.mxu1 %v1444_v3  ;;  %v1490_v3 = vor.u32 %v1642_v0, %v1489_v63  ;;  %v1654_v63 = vld [vmem:[%s2245_s5 + $0xc4] sm:$0xf0]  ;;  %v1653_v0 = vld [vmem:[%s2245_s5 + $0xc4] sm:$0xf] }
  0xff   : > { %896 = vmatpush.bf16.msra.mxu3 %v1808_v19 }
 0x102   : > { %1019 = vmatpush.bf16.msra.mxu1 %v1530_v38  ;;  %v1571_v38 = vld [vmem:[%s2245_s5 + $0x100] sm:$0xf] }
 0x103   : > { %897 = vmatpush.bf16.msra.mxu3 %v1821_v23  ;;  %v1572_v41 = vor.u32 %v1662_v39, %v1571_v38 }
 0x107   : > { %898 = vmatpush.bf16.msra.mxu3 %v1827_v25 }
 0x10b   : > { %899 = vmatpush.bf16.msra.mxu3 %v1834_v26 }
 0x10f   : > { %900 = vmatpush.bf16.msra.mxu3 %v1841_v27 }
 0x113   : > { %901 = vmatpush.bf16.msra.mxu3 %v1849_v30 }
 0x136   : > { %v615_v15 = vpop.f32.mrf.mxu2 }
 0x137   : > { %v622_v21 = vadd.f32 %v2044_v20, %v615_v15  ;;  %v1643_v15 = vld [vmem:[%s2245_s5 + $0x74] sm:$0xf] }
 0x13e   : > { %v617_v17 = vpop.f32.mrf.mxu2  ;;  %v698_v18 = vpop.f32.mrf.mxu3 }
 0x13f   : > { %v702_v22 = vadd.f32 %v698_v18, %v622_v21  ;;  %v1641_v17 = vld [vmem:[%s2245_s5 + $0x64] sm:$0xf] }
 0x146   : > { %v700_v24 = vpop.f32.mrf.mxu3  ;;  %v778_v28 = vpop.f32.mrf.mxu2 }
 0x147   : > { %v782_v29 = vadd.f32 %v778_v28, %v702_v22 }
 0x148   : > { %v2047_v31 = vpop.f32.mrf.mxu0 }
 0x149   : > { %v783_v32 = vmax.f32 %v782_v29, 0.0 }
 0x14b   : > { %v784_v33 = vpack.c.bf16 %v783_v32, %v783_v32 }
 0x14d   : > { %1485 = vmatmul.msk.bf16.vlgmr.msrb.gmra.mxu3 %vm857_vm1, %v784_v33  ;;  %1486 = vmatmul.msk.bf16.vlgmr.msrb.gmra.mxu1 %vm857_vm1, %v784_v33 }
 0x14e   : > { %v780_v34 = vpop.f32.mrf.mxu2  ;;  %1032 = vmatpush.bf16.msrb.mxu3 %v1534_v55  ;;  %v1547_v55 = vld [vmem:[%s2245_s5 + $0xd0] sm:$0xf] }
 0x150   : > { %v921_v35 = vpop.f32.mrf.mxu0 }
 0x152   : > { %1033 = vmatpush.bf16.msrb.mxu3 %v1526_v62  ;;  %v1539_v62 = vld [vmem:[%s2245_s5 + $0xc0] sm:$0xf] }
 0x156   : > { %v935_v1 = vpop.f32.mrf.mxu2  ;;  %1034 = vmatpush.bf16.msrb.mxu3 %v1518_v5  ;;  %v888_v5 = vperm.slane %v538_v4, 0 }
 0x158   : > { %v2096_v61 = vpop.f32.mrf.mxu0 }
 0x15a   : > { %1035 = vmatpush.bf16.msrb.mxu3 %v1510_v13 }
 0x15d   : > { %902 = vmatmul.bf16.vlgmr.msra.gmra.mxu3 %v1938_v9  ;;  %v1521_v9 = vld [vmem:[%s2245_s5 + $0xa0] sm:$0xf] }
 0x15e   : > { %v1522_v46 = vor.u32 %v1650_v45, %v1521_v9  ;;  %v937_v14 = vpop.f32.mrf.mxu2  ;;  %v1660_v9 = vld [vmem:[%s2245_s5 + $0xf4] sm:$0xf0]  ;;  %v1659_v45 = vld [vmem:[%s2245_s5 + $0xf4] sm:$0xf] }
 0x15f   : > { %v1568_v47 = vor.u32 %v1659_v45, %v1565_v53 }
 0x160   : > { %1020 = vmatpush.bf16.msra.mxu1 %v1522_v46  ;;  %v1072_v11 = vpop.f32.mrf.mxu0  ;;  %v1564_v46 = vor.u32 %v1660_v9, %v1563_v44 }
 0x161   : > { %v889_v11 = vperm.slane %v538_v4, 1 }
 0x164   : > { %1021 = vmatpush.bf16.msra.mxu1 %v1514_v48  ;;  %v1555_v48 = vld [vmem:[%s2245_s5 + $0xe0] sm:$0xf] }
 0x168   : > { %1022 = vmatpush.bf16.msra.mxu1 %v1506_v51  ;;  %v1556_v51 = vor.u32 %v1658_v49, %v1555_v48 }
 0x16c   : > { %1023 = vmatpush.bf16.msra.mxu1 %v1498_v58  ;;  %v1548_v58 = vor.u32 %v1656_v56, %v1547_v55 }
 0x170   : > { %1024 = vmatpush.bf16.msra.mxu1 %v1490_v3  ;;  %v1544_v3 = vor.u32 %v1653_v0, %v1541_v2 }
 0x174   : > { %1045 = vmatpush.bf16.msrb.mxu1 %v1777_v10  ;;  %v1499_v10 = vld [vmem:[%s2245_s5 + $0x78] sm:$0xf0] }
 0x175   : > { %v1502_v16 = vor.u32 %v1643_v15, %v1499_v10 }
 0x177   : > { %1036 = vmatpush.bf16.msrb.mxu3 %v1502_v16 }
 0x178   : > { %1046 = vmatpush.bf16.msrb.mxu1 %v1786_v12  ;;  %v1491_v12 = vld [vmem:[%s2245_s5 + $0x68] sm:$0xf0] }
 0x179   : > { %v1494_v18 = vor.u32 %v1641_v17, %v1491_v12 }
 0x17b   : > { %1037 = vmatpush.bf16.msrb.mxu3 %v1494_v18 }
 0x17c   : > { %1047 = vmatpush.bf16.msrb.mxu1 %v1808_v19 }
 0x180   : > { %1048 = vmatpush.bf16.msrb.mxu1 %v1821_v23 }
 0x184   : > { %1049 = vmatpush.bf16.msrb.mxu1 %v1827_v25  ;;  %v2145_v25 = vpop.f32.mrf.mxu2 }
 0x188   : > { %1050 = vmatpush.bf16.msrb.mxu1 %v1834_v26 }
 0x18c   : > { %1051 = vmatpush.bf16.msrb.mxu1 %v1841_v27  ;;  %v1088_v26 = vpop.f32.mrf.mxu2  ;;  %v1579_v27 = vld [vmem:[%s2245_s5 + $0x110] sm:$0xf] }
 0x190   : > { %1052 = vmatpush.bf16.msrb.mxu1 %v1849_v30  ;;  %v1664_v30 = vld [vmem:[%s2245_s5 + $0x114] sm:$0xf0] }
 0x191   : > { %v1580_v36 = vor.u32 %v1664_v30, %v1579_v27 }
 0x193   : > { %1170 = vmatpush.bf16.msra.mxu3 %v1580_v36 }
 0x197   : > { %1171 = vmatpush.bf16.msra.mxu3 %v1572_v41 }
 0x19b   : > { %1172 = vmatpush.bf16.msra.mxu3 %v1564_v46 }
 0x19f   : > { %1173 = vmatpush.bf16.msra.mxu3 %v1556_v51 }
 0x1a3   : > { %1174 = vmatpush.bf16.msra.mxu3 %v1548_v58 }
 0x1ca   : > { %v2132_v21 = vpop.f32.mrf.mxu1 }
 0x1cb   : > { %v893_v14 = vadd.f32 %v889_v11, %v2132_v21 }
 0x1d0   : > { %v2135_v22 = vpop.f32.mrf.mxu3 }
 0x1d1   : > { %v892_v6 = vadd.f32 %v888_v5, %v2135_v22 }
 0x1d2   : > { %v885_v19 = vpop.f32.mrf.mxu1 }
 0x1d8   : > { %v872_v24 = vpop.f32.mrf.mxu3 }
 0x1e0   : > { %v903_v28 = vpop.f32.mrf.mxu3 }
 0x1e1   : > { %v907_v29 = vadd.f32 %v2044_v20, %v903_v28 }
 0x1e3   : > { %v923_v32 = vadd.f32 %v2047_v31, %v907_v29  ;;  %v1663_v31 = vld [vmem:[%s2245_s5 + $0x114] sm:$0xf] }
 0x1e5   : > { %v939_v23 = vadd.f32 %v935_v1, %v923_v32  ;;  %v1540_v1 = vor.u32 %v1654_v63, %v1539_v62 }
 0x1e7   : > { %v940_v33 = vmax.f32 %v939_v23, 0.0  ;;  %1175 = vmatpush.bf16.msra.mxu3 %v1540_v1  ;;  %v1198_v23 = vld [vmem:[%s2247_s7] sm:$0x3] }
 0x1e8   : > { %v905_v34 = vpop.f32.mrf.mxu3 }
 0x1e9   : > { %v941_v35 = vpack.c.bf16 %v940_v33, %v940_v33  ;;  %v1200_v34 = vperm.slane %v1198_v23, 0 }
 0x1eb   : > { %1535 = vmatmul.msk.bf16.vlgmr.msra.gmra.mxu1 %vm857_vm1, %v941_v35  ;;  %1536 = vmatmul.msk.bf16.vlgmr.msrb.gmra.mxu3 %vm857_vm1, %v941_v35  ;;  %v1201_v35 = vperm.slane %v1198_v23, 1 }
 0x1fb   : > { %1053 = vmatmul.bf16.vlgmr.msrb.gmra.mxu1 %v2035_v8  ;;  %v1581_v8 = vld [vmem:[%s2245_s5 + $0x118] sm:$0xf0] }
 0x1fc   : > { %v1584_v37 = vor.u32 %v1663_v31, %v1581_v8  ;;  %v1675_v8 = vld [vmem:[#allocation3] ss:$0 sm:$0xff] }
 0x1fe   : > { %1183 = vmatpush.bf16.msra.mxu1 %v1584_v37 }
 0x202   : > { %1184 = vmatpush.bf16.msra.mxu1 %v1576_v43 }
 0x206   : > { %1185 = vmatpush.bf16.msra.mxu1 %v1568_v47 }
 0x20a   : > { %1186 = vmatpush.bf16.msra.mxu1 %v1560_v54 }
 0x20e   : > { %1187 = vmatpush.bf16.msra.mxu1 %v1552_v60 }
 0x212   : > { %1188 = vmatpush.bf16.msra.mxu1 %v1544_v3 }
 0x268   : > { %v1026_v7 = vpop.f32.mrf.mxu1 }
 0x269   : > { %v1043_v13 = vadd.f32 %v1026_v7, %v892_v6 }
 0x26e   : > { %v1039_v15 = vpop.f32.mrf.mxu3 }
 0x26f   : > { %v1044_v10 = vadd.f32 %v1039_v15, %v893_v14 }
 0x270   : > { %v1028_v16 = vpop.f32.mrf.mxu1 }
 0x276   : > { %v1041_v17 = vpop.f32.mrf.mxu3 }
 0x278   : > { %v1054_v12 = vpop.f32.mrf.mxu1 }
 0x279   : > { %v1058_v18 = vadd.f32 %v2044_v20, %v1054_v12 }
 0x27b   : > { %v1074_v19 = vadd.f32 %v2096_v61, %v1058_v18 }
 0x27d   : > { %v1090_v24 = vadd.f32 %v2145_v25, %v1074_v19 }
 0x27f   : > { %v1091_v28 = vmax.f32 %v1090_v24, 0.0 }
 0x280   : > { %v1056_v29 = vpop.f32.mrf.mxu1 }
 0x281   : > { %v1092_v32 = vpack.c.bf16 %v1091_v28, %v1091_v28 }
 0x283   : > { %1585 = vmatmul.msk.bf16.vlgmr.msra.gmra.mxu3 %vm857_vm1, %v1092_v32  ;;  %1586 = vmatmul.msk.bf16.vlgmr.msra.gmra.mxu1 %vm857_vm1, %v1092_v32 }
 0x300   : > { %v1190_v21 = vpop.f32.mrf.mxu1 }
 0x301   : > { %v1195_v22 = vadd.f32 %v1190_v21, %v1044_v10 }
 0x303   : > { %v1197_v33 = vmax.f32 %v1195_v22, 0.0 }
 0x305   : > { %v1205_v30 = vmul.f32 %v1201_v35, %v1197_v33 }
 0x306   : > { %v1177_v20 = vpop.f32.mrf.mxu3 }
 0x307   : > { %v1194_v61 = vadd.f32 %v1177_v20, %v1043_v13 }
 0x308   : > { %v1192_v25 = vpop.f32.mrf.mxu1 }
 0x309   : > { %v1196_v26 = vmax.f32 %v1194_v61, 0.0 }
 0x30b   : > { %v1204_v27 = vmul.f32 %v1200_v34, %v1196_v26 }
 0x30d   : > { %v1206_v31 = vadd.f32 %v1205_v30, %v1204_v27 }
 0x30e   : > { %v1179_v36 = vpop.f32.mrf.mxu3 }
 0x30f   : > { %1207 = vadd.xlane.f32.xlu0 %v1206_v31 }
 0x382   : > { %v1208_v37 = vpop.xlane.xlu0 %1207 }
 0x383   : > { %v1213_v38 = vadd.f32 %v1675_v8, %v1208_v37 }
 0x385   : > { %1215 = vst.msk [vmem:[%s337_s20] sm:$0xff] %vm1214_vm2, %v1213_v38 }
 0x386 PF: > { %s21_s11 = sadd.s32 1, %s1682_s11  }
 0x387   : > { %p18_p5 = scmp.ge.s32.totalorder %s21_s11, 4  }
 0x389   :  { %20 = sbr.rel (!%p18_p5) target bundleno = 3 (0x3), region = 86 }

</bundles_post_ra>
